<compile_context>
chip_gen: v6e
topology: v6e:2x2x1
jax: 0.10.0
libtpu: 0.0.40
codegen_flags: <defaults>
</compile_context>

<pallas_src>
import functools

import jax
import jax.numpy as jnp
from jax.experimental import pallas as pl
from jax.experimental.pallas import tpu as pltpu

HIDDEN = 32
VOCAB = 64
PAD_ID = 1  # RoBERTa pad id: attention_mask = inputs.ne(1)


# ----------------------------------------------------------------------------
# Single fused kernel:
#   pooled  = masked-mean-pool(emb_table[ids])          (gather via one-hot)
#   vec     = tanh(pooled @ W + b)                      (pooler head)
#   scores  = nl_vec @ code_vec^T
#   loss    = mean_i ( logsumexp(scores[i,:]) - <nl_vec[i], code_vec[i]> )
# ----------------------------------------------------------------------------
def _fused_forward_kernel(code_ids_ref, nl_ids_ref, emb_ref, w_ref, b_ref,
                          code_vec_ref, nl_vec_ref, scores_ref, loss_ref):
    emb = emb_ref[...]          # (V, H) f32, resident in VMEM (8 KiB)
    w = w_ref[...]              # (H, H)
    b = b_ref[...]              # (1, H), loaded once (hoisted broadcast)

    def encode(ids):            # ids: (N, S) int32
        n, s = ids.shape
        v = emb.shape[0]
        vocab_iota = jax.lax.broadcasted_iota(jnp.int32, (n, v), 1)
        counts = jnp.zeros((n, v), jnp.float32)
        # Short, static (unrolled) loop over the sequence: accumulate masked
        # one-hot token counts.  Gather+pool then collapses to counts @ emb,
        # which is MXU-friendly and avoids dynamic gathers entirely.
        for t in range(s):
            tok = ids[:, t:t + 1]                     # (N, 1)
            valid = tok != PAD_ID                     # attention mask bit
            hit = (tok == vocab_iota) & valid         # (N, V) bool
            counts = counts + jnp.where(hit, 1.0, 0.0)
        denom = jnp.maximum(jnp.sum(counts, axis=-1, keepdims=True), 1.0)
        pooled = jnp.dot(counts, emb,
                         preferred_element_type=jnp.float32) / denom
        return jnp.tanh(jnp.dot(pooled, w,
                                preferred_element_type=jnp.float32) + b)

    code_vec = encode(code_ids_ref[...])              # (bs, H)
    nl_vec = encode(nl_ids_ref[...])                  # (bs, H)

    code_vec_ref[...] = code_vec
    nl_vec_ref[...] = nl_vec

    # scores[i, j] = <nl_vec[i], code_vec[j]>  (contract last dims, no transpose)
    scores = jax.lax.dot_general(
        nl_vec, code_vec, (((1,), (1,)), ((), ())),
        preferred_element_type=jnp.float32)
    scores_ref[...] = scores

    bs = scores.shape[0]
    m = jnp.max(scores, axis=-1, keepdims=True)
    lse = jnp.log(jnp.sum(jnp.exp(scores - m), axis=-1, keepdims=True)) + m
    # Diagonal directly (scores[i, i] == <nl_vec[i], code_vec[i]>).
    diag = jnp.sum(nl_vec * code_vec, axis=-1, keepdims=True)
    # Scalar loss -> SMEM (scalar path), matches CrossEntropyLoss mean reduction.
    loss_ref[0] = jnp.sum(lse - diag) * (1.0 / bs)


# ----------------------------------------------------------------------------
# Model.forward equivalent (single fused pallas_call, no grid)
# ----------------------------------------------------------------------------
@functools.partial(jax.jit, static_argnames=("return_vec",))
def model_forward(code_inputs, nl_inputs, emb_table, w_pool, b_pool,
                  return_vec=False):
    bs, _ = code_inputs.shape
    h = emb_table.shape[1]
    vmem = pl.BlockSpec(memory_space=pltpu.MemorySpace.VMEM)
    code_vec, nl_vec, scores, loss = pl.pallas_call(
        _fused_forward_kernel,
        out_shape=(
            jax.ShapeDtypeStruct((bs, h), jnp.float32),    # code_vec
            jax.ShapeDtypeStruct((bs, h), jnp.float32),    # nl_vec
            jax.ShapeDtypeStruct((bs, bs), jnp.float32),   # scores
            jax.ShapeDtypeStruct((1,), jnp.float32),       # loss (scalar)
        ),
        in_specs=[vmem, vmem, vmem, vmem, vmem],
        out_specs=(
            vmem, vmem, vmem,
            pl.BlockSpec(memory_space=pltpu.MemorySpace.SMEM),
        ),
    )(code_inputs, nl_inputs, emb_table, w_pool, b_pool)
    if return_vec:
        return code_vec, nl_vec
    return loss[0], code_vec, nl_vec, scores


# ----------------------------------------------------------------------------
# Pure-JAX reference (mirrors the PyTorch forward with the same stand-in encoder)
# ----------------------------------------------------------------------------
def reference_forward(code_inputs, nl_inputs, emb_table, w_pool, b_pool):
    hi = jax.lax.Precision.HIGHEST
    bs = code_inputs.shape[0]
    inputs = jnp.concatenate([code_inputs, nl_inputs], axis=0)
    mask = (inputs != PAD_ID).astype(jnp.float32)[..., None]
    emb = emb_table[inputs]
    pooled = (emb * mask).sum(axis=1) / jnp.maximum(mask.sum(axis=1), 1.0)
    out = jnp.tanh(jnp.dot(pooled, w_pool, precision=hi) + b_pool)
    code_vec, nl_vec = out[:bs], out[bs:]
    scores = jnp.dot(nl_vec, code_vec.T, precision=hi)
    lse = jax.scipy.special.logsumexp(scores, axis=-1)
    diag = jnp.diagonal(scores)
    loss = jnp.mean(lse - diag)
    return loss, code_vec, nl_vec, scores


if __name__ == "__main__":
    key = jax.random.PRNGKey(0)
    bs, seq = 4, 8
    k1, k2, k3, k4 = jax.random.split(key, 4)

    code_inputs = jax.random.randint(k1, (bs, seq), 2, VOCAB).astype(jnp.int32)
    nl_inputs = jax.random.randint(k2, (bs, seq), 2, VOCAB).astype(jnp.int32)
    # add some padding (token id 1) so the attention mask is non-trivial
    code_inputs = code_inputs.at[:, -2:].set(PAD_ID)
    nl_inputs = nl_inputs.at[:, -3:].set(PAD_ID)

    emb_table = (0.02 * jax.random.normal(k3, (VOCAB, HIDDEN))).astype(jnp.float32)
    w_pool = (0.02 * jax.random.normal(k4, (HIDDEN, HIDDEN))).astype(jnp.float32)
    b_pool = jnp.zeros((1, HIDDEN), jnp.float32)

    loss, code_vec, nl_vec, scores = model_forward(
        code_inputs, nl_inputs, emb_table, w_pool, b_pool)
    jax.block_until_ready((loss, code_vec, nl_vec, scores))

    ref_loss, ref_code, ref_nl, ref_scores = reference_forward(
        code_inputs, nl_inputs, emb_table, w_pool, b_pool)

    assert scores.shape == (bs, bs)
    assert code_vec.shape == (bs, HIDDEN) and nl_vec.shape == (bs, HIDDEN)
    assert jnp.allclose(code_vec, ref_code, rtol=1e-4, atol=1e-5)
    assert jnp.allclose(nl_vec, ref_nl, rtol=1e-4, atol=1e-5)
    assert jnp.allclose(scores, ref_scores, rtol=1e-4, atol=1e-5)
    assert jnp.allclose(loss, ref_loss, rtol=1e-4, atol=1e-5)
    print("KERNEL_OK")
</pallas_src>

<mosaic_0001>
module attributes {stable_mosaic.version = 11 : i64} {
  func.func @_fused_forward_kernel(%arg0: memref<4x8xi32, #tpu.memory_space<vmem>>, %arg1: memref<4x8xi32, #tpu.memory_space<vmem>>, %arg2: memref<64x32xf32, #tpu.memory_space<vmem>>, %arg3: memref<32x32xf32, #tpu.memory_space<vmem>>, %arg4: memref<1x32xf32, #tpu.memory_space<vmem>>, %arg5: memref<4x32xf32, #tpu.memory_space<vmem>>, %arg6: memref<4x32xf32, #tpu.memory_space<vmem>>, %arg7: memref<4x4xf32, #tpu.memory_space<vmem>>, %arg8: memref<1xf32, #tpu.memory_space<smem>>) attributes {dimension_semantics = [], scalar_prefetch = 0 : i64, scratch_operands = 0 : i64, tpu.core_type = #tpu.core_type<tc>} {
    %c0 = arith.constant 0 : index
    %c0_0 = arith.constant 0 : index
    %0 = vector.load %arg2[%c0, %c0_0] : memref<64x32xf32, #tpu.memory_space<vmem>>, vector<64x32xf32>
    %c0_1 = arith.constant 0 : index
    %c0_2 = arith.constant 0 : index
    %1 = vector.load %arg3[%c0_1, %c0_2] : memref<32x32xf32, #tpu.memory_space<vmem>>, vector<32x32xf32>
    %c0_3 = arith.constant 0 : index
    %c0_4 = arith.constant 0 : index
    %2 = vector.load %arg4[%c0_3, %c0_4] : memref<1x32xf32, #tpu.memory_space<vmem>>, vector<1x32xf32>
    %c0_5 = arith.constant 0 : index
    %c0_6 = arith.constant 0 : index
    %3 = vector.load %arg0[%c0_5, %c0_6] : memref<4x8xi32, #tpu.memory_space<vmem>>, vector<4x8xi32>
    %4 = tpu.iota {dimensions = array<i32: 1>} : vector<4x64xi32>
    %cst = arith.constant 0.000000e+00 : f32
    %5 = vector.broadcast %cst : f32 to vector<4x64xf32>
    %6 = vector.extract_strided_slice %3 {offsets = [0, 0], sizes = [4, 1], strides = [1, 1]} : vector<4x8xi32> to vector<4x1xi32>
    %c1_i32 = arith.constant 1 : i32
    %7 = vector.broadcast %c1_i32 : i32 to vector<4x1xi32>
    %8 = arith.cmpi ne, %6, %7 : vector<4x1xi32>
    %9 = vector.broadcast %6 : vector<4x1xi32> to vector<4x64xi32>
    %10 = arith.cmpi eq, %9, %4 : vector<4x64xi32>
    %11 = vector.broadcast %8 : vector<4x1xi1> to vector<4x64xi1>
    %12 = arith.andi %10, %11 : vector<4x64xi1>
    %cst_7 = arith.constant 1.000000e+00 : f32
    %cst_8 = arith.constant 0.000000e+00 : f32
    %13 = vector.broadcast %cst_7 : f32 to vector<4x64xf32>
    %14 = vector.broadcast %cst_8 : f32 to vector<4x64xf32>
    %15 = arith.select %12, %13, %14 : vector<4x64xi1>, vector<4x64xf32>
    %16 = arith.addf %5, %15 : vector<4x64xf32>
    %17 = vector.extract_strided_slice %3 {offsets = [0, 1], sizes = [4, 1], strides = [1, 1]} : vector<4x8xi32> to vector<4x1xi32>
    %c1_i32_9 = arith.constant 1 : i32
    %18 = vector.broadcast %c1_i32_9 : i32 to vector<4x1xi32>
    %19 = arith.cmpi ne, %17, %18 : vector<4x1xi32>
    %20 = vector.broadcast %17 : vector<4x1xi32> to vector<4x64xi32>
    %21 = arith.cmpi eq, %20, %4 : vector<4x64xi32>
    %22 = vector.broadcast %19 : vector<4x1xi1> to vector<4x64xi1>
    %23 = arith.andi %21, %22 : vector<4x64xi1>
    %cst_10 = arith.constant 1.000000e+00 : f32
    %cst_11 = arith.constant 0.000000e+00 : f32
    %24 = vector.broadcast %cst_10 : f32 to vector<4x64xf32>
    %25 = vector.broadcast %cst_11 : f32 to vector<4x64xf32>
    %26 = arith.select %23, %24, %25 : vector<4x64xi1>, vector<4x64xf32>
    %27 = arith.addf %16, %26 : vector<4x64xf32>
    %28 = vector.extract_strided_slice %3 {offsets = [0, 2], sizes = [4, 1], strides = [1, 1]} : vector<4x8xi32> to vector<4x1xi32>
    %c1_i32_12 = arith.constant 1 : i32
    %29 = vector.broadcast %c1_i32_12 : i32 to vector<4x1xi32>
    %30 = arith.cmpi ne, %28, %29 : vector<4x1xi32>
    %31 = vector.broadcast %28 : vector<4x1xi32> to vector<4x64xi32>
    %32 = arith.cmpi eq, %31, %4 : vector<4x64xi32>
    %33 = vector.broadcast %30 : vector<4x1xi1> to vector<4x64xi1>
    %34 = arith.andi %32, %33 : vector<4x64xi1>
    %cst_13 = arith.constant 1.000000e+00 : f32
    %cst_14 = arith.constant 0.000000e+00 : f32
    %35 = vector.broadcast %cst_13 : f32 to vector<4x64xf32>
    %36 = vector.broadcast %cst_14 : f32 to vector<4x64xf32>
    %37 = arith.select %34, %35, %36 : vector<4x64xi1>, vector<4x64xf32>
    %38 = arith.addf %27, %37 : vector<4x64xf32>
    %39 = vector.extract_strided_slice %3 {offsets = [0, 3], sizes = [4, 1], strides = [1, 1]} : vector<4x8xi32> to vector<4x1xi32>
    %c1_i32_15 = arith.constant 1 : i32
    %40 = vector.broadcast %c1_i32_15 : i32 to vector<4x1xi32>
    %41 = arith.cmpi ne, %39, %40 : vector<4x1xi32>
    %42 = vector.broadcast %39 : vector<4x1xi32> to vector<4x64xi32>
    %43 = arith.cmpi eq, %42, %4 : vector<4x64xi32>
    %44 = vector.broadcast %41 : vector<4x1xi1> to vector<4x64xi1>
    %45 = arith.andi %43, %44 : vector<4x64xi1>
    %cst_16 = arith.constant 1.000000e+00 : f32
    %cst_17 = arith.constant 0.000000e+00 : f32
    %46 = vector.broadcast %cst_16 : f32 to vector<4x64xf32>
    %47 = vector.broadcast %cst_17 : f32 to vector<4x64xf32>
    %48 = arith.select %45, %46, %47 : vector<4x64xi1>, vector<4x64xf32>
    %49 = arith.addf %38, %48 : vector<4x64xf32>
    %50 = vector.extract_strided_slice %3 {offsets = [0, 4], sizes = [4, 1], strides = [1, 1]} : vector<4x8xi32> to vector<4x1xi32>
    %c1_i32_18 = arith.constant 1 : i32
    %51 = vector.broadcast %c1_i32_18 : i32 to vector<4x1xi32>
    %52 = arith.cmpi ne, %50, %51 : vector<4x1xi32>
    %53 = vector.broadcast %50 : vector<4x1xi32> to vector<4x64xi32>
    %54 = arith.cmpi eq, %53, %4 : vector<4x64xi32>
    %55 = vector.broadcast %52 : vector<4x1xi1> to vector<4x64xi1>
    %56 = arith.andi %54, %55 : vector<4x64xi1>
    %cst_19 = arith.constant 1.000000e+00 : f32
    %cst_20 = arith.constant 0.000000e+00 : f32
    %57 = vector.broadcast %cst_19 : f32 to vector<4x64xf32>
    %58 = vector.broadcast %cst_20 : f32 to vector<4x64xf32>
    %59 = arith.select %56, %57, %58 : vector<4x64xi1>, vector<4x64xf32>
    %60 = arith.addf %49, %59 : vector<4x64xf32>
    %61 = vector.extract_strided_slice %3 {offsets = [0, 5], sizes = [4, 1], strides = [1, 1]} : vector<4x8xi32> to vector<4x1xi32>
    %c1_i32_21 = arith.constant 1 : i32
    %62 = vector.broadcast %c1_i32_21 : i32 to vector<4x1xi32>
    %63 = arith.cmpi ne, %61, %62 : vector<4x1xi32>
    %64 = vector.broadcast %61 : vector<4x1xi32> to vector<4x64xi32>
    %65 = arith.cmpi eq, %64, %4 : vector<4x64xi32>
    %66 = vector.broadcast %63 : vector<4x1xi1> to vector<4x64xi1>
    %67 = arith.andi %65, %66 : vector<4x64xi1>
    %cst_22 = arith.constant 1.000000e+00 : f32
    %cst_23 = arith.constant 0.000000e+00 : f32
    %68 = vector.broadcast %cst_22 : f32 to vector<4x64xf32>
    %69 = vector.broadcast %cst_23 : f32 to vector<4x64xf32>
    %70 = arith.select %67, %68, %69 : vector<4x64xi1>, vector<4x64xf32>
    %71 = arith.addf %60, %70 : vector<4x64xf32>
    %72 = vector.extract_strided_slice %3 {offsets = [0, 6], sizes = [4, 1], strides = [1, 1]} : vector<4x8xi32> to vector<4x1xi32>
    %c1_i32_24 = arith.constant 1 : i32
    %73 = vector.broadcast %c1_i32_24 : i32 to vector<4x1xi32>
    %74 = arith.cmpi ne, %72, %73 : vector<4x1xi32>
    %75 = vector.broadcast %72 : vector<4x1xi32> to vector<4x64xi32>
    %76 = arith.cmpi eq, %75, %4 : vector<4x64xi32>
    %77 = vector.broadcast %74 : vector<4x1xi1> to vector<4x64xi1>
    %78 = arith.andi %76, %77 : vector<4x64xi1>
    %cst_25 = arith.constant 1.000000e+00 : f32
    %cst_26 = arith.constant 0.000000e+00 : f32
    %79 = vector.broadcast %cst_25 : f32 to vector<4x64xf32>
    %80 = vector.broadcast %cst_26 : f32 to vector<4x64xf32>
    %81 = arith.select %78, %79, %80 : vector<4x64xi1>, vector<4x64xf32>
    %82 = arith.addf %71, %81 : vector<4x64xf32>
    %83 = vector.extract_strided_slice %3 {offsets = [0, 7], sizes = [4, 1], strides = [1, 1]} : vector<4x8xi32> to vector<4x1xi32>
    %c1_i32_27 = arith.constant 1 : i32
    %84 = vector.broadcast %c1_i32_27 : i32 to vector<4x1xi32>
    %85 = arith.cmpi ne, %83, %84 : vector<4x1xi32>
    %86 = vector.broadcast %83 : vector<4x1xi32> to vector<4x64xi32>
    %87 = arith.cmpi eq, %86, %4 : vector<4x64xi32>
    %88 = vector.broadcast %85 : vector<4x1xi1> to vector<4x64xi1>
    %89 = arith.andi %87, %88 : vector<4x64xi1>
    %cst_28 = arith.constant 1.000000e+00 : f32
    %cst_29 = arith.constant 0.000000e+00 : f32
    %90 = vector.broadcast %cst_28 : f32 to vector<4x64xf32>
    %91 = vector.broadcast %cst_29 : f32 to vector<4x64xf32>
    %92 = arith.select %89, %90, %91 : vector<4x64xi1>, vector<4x64xf32>
    %93 = arith.addf %82, %92 : vector<4x64xf32>
    %cst_30 = arith.constant dense<0.000000e+00> : vector<4xf32>
    %94 = vector.multi_reduction <add>, %93, %cst_30 [1] : vector<4x64xf32> to vector<4xf32>
    %95 = vector.shape_cast %94 : vector<4xf32> to vector<4x1xf32>
    %cst_31 = arith.constant 1.000000e+00 : f32
    %96 = vector.broadcast %cst_31 : f32 to vector<4x1xf32>
    %97 = arith.maximumf %95, %96 : vector<4x1xf32>
    %cst_32 = arith.constant dense<0.000000e+00> : vector<4x32xf32>
    %98 = tpu.matmul %93, %0, %cst_32 {dimension_numbers = #tpu.dot_dimension_numbers<[1], [0], [0], [1], [0, 0, 1, 1], [], []>} : vector<4x64xf32>, vector<64x32xf32>, vector<4x32xf32> -> vector<4x32xf32>
    %99 = vector.broadcast %97 : vector<4x1xf32> to vector<4x32xf32>
    %100 = arith.divf %98, %99 : vector<4x32xf32>
    %cst_33 = arith.constant dense<0.000000e+00> : vector<4x32xf32>
    %101 = tpu.matmul %100, %1, %cst_33 {dimension_numbers = #tpu.dot_dimension_numbers<[1], [0], [0], [1], [0, 0, 1, 1], [], []>} : vector<4x32xf32>, vector<32x32xf32>, vector<4x32xf32> -> vector<4x32xf32>
    %102 = vector.broadcast %2 : vector<1x32xf32> to vector<4x32xf32>
    %103 = arith.addf %101, %102 : vector<4x32xf32>
    %104 = math.tanh %103 : vector<4x32xf32>
    %c0_34 = arith.constant 0 : index
    %c0_35 = arith.constant 0 : index
    %105 = vector.load %arg1[%c0_34, %c0_35] : memref<4x8xi32, #tpu.memory_space<vmem>>, vector<4x8xi32>
    %106 = tpu.iota {dimensions = array<i32: 1>} : vector<4x64xi32>
    %cst_36 = arith.constant 0.000000e+00 : f32
    %107 = vector.broadcast %cst_36 : f32 to vector<4x64xf32>
    %108 = vector.extract_strided_slice %105 {offsets = [0, 0], sizes = [4, 1], strides = [1, 1]} : vector<4x8xi32> to vector<4x1xi32>
    %c1_i32_37 = arith.constant 1 : i32
    %109 = vector.broadcast %c1_i32_37 : i32 to vector<4x1xi32>
    %110 = arith.cmpi ne, %108, %109 : vector<4x1xi32>
    %111 = vector.broadcast %108 : vector<4x1xi32> to vector<4x64xi32>
    %112 = arith.cmpi eq, %111, %106 : vector<4x64xi32>
    %113 = vector.broadcast %110 : vector<4x1xi1> to vector<4x64xi1>
    %114 = arith.andi %112, %113 : vector<4x64xi1>
    %cst_38 = arith.constant 1.000000e+00 : f32
    %cst_39 = arith.constant 0.000000e+00 : f32
    %115 = vector.broadcast %cst_38 : f32 to vector<4x64xf32>
    %116 = vector.broadcast %cst_39 : f32 to vector<4x64xf32>
    %117 = arith.select %114, %115, %116 : vector<4x64xi1>, vector<4x64xf32>
    %118 = arith.addf %107, %117 : vector<4x64xf32>
    %119 = vector.extract_strided_slice %105 {offsets = [0, 1], sizes = [4, 1], strides = [1, 1]} : vector<4x8xi32> to vector<4x1xi32>
    %c1_i32_40 = arith.constant 1 : i32
    %120 = vector.broadcast %c1_i32_40 : i32 to vector<4x1xi32>
    %121 = arith.cmpi ne, %119, %120 : vector<4x1xi32>
    %122 = vector.broadcast %119 : vector<4x1xi32> to vector<4x64xi32>
    %123 = arith.cmpi eq, %122, %106 : vector<4x64xi32>
    %124 = vector.broadcast %121 : vector<4x1xi1> to vector<4x64xi1>
    %125 = arith.andi %123, %124 : vector<4x64xi1>
    %cst_41 = arith.constant 1.000000e+00 : f32
    %cst_42 = arith.constant 0.000000e+00 : f32
    %126 = vector.broadcast %cst_41 : f32 to vector<4x64xf32>
    %127 = vector.broadcast %cst_42 : f32 to vector<4x64xf32>
    %128 = arith.select %125, %126, %127 : vector<4x64xi1>, vector<4x64xf32>
    %129 = arith.addf %118, %128 : vector<4x64xf32>
    %130 = vector.extract_strided_slice %105 {offsets = [0, 2], sizes = [4, 1], strides = [1, 1]} : vector<4x8xi32> to vector<4x1xi32>
    %c1_i32_43 = arith.constant 1 : i32
    %131 = vector.broadcast %c1_i32_43 : i32 to vector<4x1xi32>
    %132 = arith.cmpi ne, %130, %131 : vector<4x1xi32>
    %133 = vector.broadcast %130 : vector<4x1xi32> to vector<4x64xi32>
    %134 = arith.cmpi eq, %133, %106 : vector<4x64xi32>
    %135 = vector.broadcast %132 : vector<4x1xi1> to vector<4x64xi1>
    %136 = arith.andi %134, %135 : vector<4x64xi1>
    %cst_44 = arith.constant 1.000000e+00 : f32
    %cst_45 = arith.constant 0.000000e+00 : f32
    %137 = vector.broadcast %cst_44 : f32 to vector<4x64xf32>
    %138 = vector.broadcast %cst_45 : f32 to vector<4x64xf32>
    %139 = arith.select %136, %137, %138 : vector<4x64xi1>, vector<4x64xf32>
    %140 = arith.addf %129, %139 : vector<4x64xf32>
    %141 = vector.extract_strided_slice %105 {offsets = [0, 3], sizes = [4, 1], strides = [1, 1]} : vector<4x8xi32> to vector<4x1xi32>
    %c1_i32_46 = arith.constant 1 : i32
    %142 = vector.broadcast %c1_i32_46 : i32 to vector<4x1xi32>
    %143 = arith.cmpi ne, %141, %142 : vector<4x1xi32>
    %144 = vector.broadcast %141 : vector<4x1xi32> to vector<4x64xi32>
    %145 = arith.cmpi eq, %144, %106 : vector<4x64xi32>
    %146 = vector.broadcast %143 : vector<4x1xi1> to vector<4x64xi1>
    %147 = arith.andi %145, %146 : vector<4x64xi1>
    %cst_47 = arith.constant 1.000000e+00 : f32
    %cst_48 = arith.constant 0.000000e+00 : f32
    %148 = vector.broadcast %cst_47 : f32 to vector<4x64xf32>
    %149 = vector.broadcast %cst_48 : f32 to vector<4x64xf32>
    %150 = arith.select %147, %148, %149 : vector<4x64xi1>, vector<4x64xf32>
    %151 = arith.addf %140, %150 : vector<4x64xf32>
    %152 = vector.extract_strided_slice %105 {offsets = [0, 4], sizes = [4, 1], strides = [1, 1]} : vector<4x8xi32> to vector<4x1xi32>
    %c1_i32_49 = arith.constant 1 : i32
    %153 = vector.broadcast %c1_i32_49 : i32 to vector<4x1xi32>
    %154 = arith.cmpi ne, %152, %153 : vector<4x1xi32>
    %155 = vector.broadcast %152 : vector<4x1xi32> to vector<4x64xi32>
    %156 = arith.cmpi eq, %155, %106 : vector<4x64xi32>
    %157 = vector.broadcast %154 : vector<4x1xi1> to vector<4x64xi1>
    %158 = arith.andi %156, %157 : vector<4x64xi1>
    %cst_50 = arith.constant 1.000000e+00 : f32
    %cst_51 = arith.constant 0.000000e+00 : f32
    %159 = vector.broadcast %cst_50 : f32 to vector<4x64xf32>
    %160 = vector.broadcast %cst_51 : f32 to vector<4x64xf32>
    %161 = arith.select %158, %159, %160 : vector<4x64xi1>, vector<4x64xf32>
    %162 = arith.addf %151, %161 : vector<4x64xf32>
    %163 = vector.extract_strided_slice %105 {offsets = [0, 5], sizes = [4, 1], strides = [1, 1]} : vector<4x8xi32> to vector<4x1xi32>
    %c1_i32_52 = arith.constant 1 : i32
    %164 = vector.broadcast %c1_i32_52 : i32 to vector<4x1xi32>
    %165 = arith.cmpi ne, %163, %164 : vector<4x1xi32>
    %166 = vector.broadcast %163 : vector<4x1xi32> to vector<4x64xi32>
    %167 = arith.cmpi eq, %166, %106 : vector<4x64xi32>
    %168 = vector.broadcast %165 : vector<4x1xi1> to vector<4x64xi1>
    %169 = arith.andi %167, %168 : vector<4x64xi1>
    %cst_53 = arith.constant 1.000000e+00 : f32
    %cst_54 = arith.constant 0.000000e+00 : f32
    %170 = vector.broadcast %cst_53 : f32 to vector<4x64xf32>
    %171 = vector.broadcast %cst_54 : f32 to vector<4x64xf32>
    %172 = arith.select %169, %170, %171 : vector<4x64xi1>, vector<4x64xf32>
    %173 = arith.addf %162, %172 : vector<4x64xf32>
    %174 = vector.extract_strided_slice %105 {offsets = [0, 6], sizes = [4, 1], strides = [1, 1]} : vector<4x8xi32> to vector<4x1xi32>
    %c1_i32_55 = arith.constant 1 : i32
    %175 = vector.broadcast %c1_i32_55 : i32 to vector<4x1xi32>
    %176 = arith.cmpi ne, %174, %175 : vector<4x1xi32>
    %177 = vector.broadcast %174 : vector<4x1xi32> to vector<4x64xi32>
    %178 = arith.cmpi eq, %177, %106 : vector<4x64xi32>
    %179 = vector.broadcast %176 : vector<4x1xi1> to vector<4x64xi1>
    %180 = arith.andi %178, %179 : vector<4x64xi1>
    %cst_56 = arith.constant 1.000000e+00 : f32
    %cst_57 = arith.constant 0.000000e+00 : f32
    %181 = vector.broadcast %cst_56 : f32 to vector<4x64xf32>
    %182 = vector.broadcast %cst_57 : f32 to vector<4x64xf32>
    %183 = arith.select %180, %181, %182 : vector<4x64xi1>, vector<4x64xf32>
    %184 = arith.addf %173, %183 : vector<4x64xf32>
    %185 = vector.extract_strided_slice %105 {offsets = [0, 7], sizes = [4, 1], strides = [1, 1]} : vector<4x8xi32> to vector<4x1xi32>
    %c1_i32_58 = arith.constant 1 : i32
    %186 = vector.broadcast %c1_i32_58 : i32 to vector<4x1xi32>
    %187 = arith.cmpi ne, %185, %186 : vector<4x1xi32>
    %188 = vector.broadcast %185 : vector<4x1xi32> to vector<4x64xi32>
    %189 = arith.cmpi eq, %188, %106 : vector<4x64xi32>
    %190 = vector.broadcast %187 : vector<4x1xi1> to vector<4x64xi1>
    %191 = arith.andi %189, %190 : vector<4x64xi1>
    %cst_59 = arith.constant 1.000000e+00 : f32
    %cst_60 = arith.constant 0.000000e+00 : f32
    %192 = vector.broadcast %cst_59 : f32 to vector<4x64xf32>
    %193 = vector.broadcast %cst_60 : f32 to vector<4x64xf32>
    %194 = arith.select %191, %192, %193 : vector<4x64xi1>, vector<4x64xf32>
    %195 = arith.addf %184, %194 : vector<4x64xf32>
    %cst_61 = arith.constant dense<0.000000e+00> : vector<4xf32>
    %196 = vector.multi_reduction <add>, %195, %cst_61 [1] : vector<4x64xf32> to vector<4xf32>
    %197 = vector.shape_cast %196 : vector<4xf32> to vector<4x1xf32>
    %cst_62 = arith.constant 1.000000e+00 : f32
    %198 = vector.broadcast %cst_62 : f32 to vector<4x1xf32>
    %199 = arith.maximumf %197, %198 : vector<4x1xf32>
    %cst_63 = arith.constant dense<0.000000e+00> : vector<4x32xf32>
    %200 = tpu.matmul %195, %0, %cst_63 {dimension_numbers = #tpu.dot_dimension_numbers<[1], [0], [0], [1], [0, 0, 1, 1], [], []>} : vector<4x64xf32>, vector<64x32xf32>, vector<4x32xf32> -> vector<4x32xf32>
    %201 = vector.broadcast %199 : vector<4x1xf32> to vector<4x32xf32>
    %202 = arith.divf %200, %201 : vector<4x32xf32>
    %cst_64 = arith.constant dense<0.000000e+00> : vector<4x32xf32>
    %203 = tpu.matmul %202, %1, %cst_64 {dimension_numbers = #tpu.dot_dimension_numbers<[1], [0], [0], [1], [0, 0, 1, 1], [], []>} : vector<4x32xf32>, vector<32x32xf32>, vector<4x32xf32> -> vector<4x32xf32>
    %204 = vector.broadcast %2 : vector<1x32xf32> to vector<4x32xf32>
    %205 = arith.addf %203, %204 : vector<4x32xf32>
    %206 = math.tanh %205 : vector<4x32xf32>
    %c0_65 = arith.constant 0 : index
    %c0_66 = arith.constant 0 : index
    %207 = vector.load %arg5[%c0_65, %c0_66] : memref<4x32xf32, #tpu.memory_space<vmem>>, vector<4x32xf32>
    tpu.vector_store %arg5[%c0_65, %c0_66], %104 {strides = array<i32>} : memref<4x32xf32, #tpu.memory_space<vmem>>, vector<4x32xf32>,
    %c0_67 = arith.constant 0 : index
    %c0_68 = arith.constant 0 : index
    %208 = vector.load %arg6[%c0_67, %c0_68] : memref<4x32xf32, #tpu.memory_space<vmem>>, vector<4x32xf32>
    tpu.vector_store %arg6[%c0_67, %c0_68], %206 {strides = array<i32>} : memref<4x32xf32, #tpu.memory_space<vmem>>, vector<4x32xf32>,
    %cst_69 = arith.constant dense<0.000000e+00> : vector<4x4xf32>
    %209 = tpu.matmul %206, %104, %cst_69 {dimension_numbers = #tpu.dot_dimension_numbers<[1], [1], [0], [0], [0, 0, 1, 0], [], []>} : vector<4x32xf32>, vector<4x32xf32>, vector<4x4xf32> -> vector<4x4xf32>
    %c0_70 = arith.constant 0 : index
    %c0_71 = arith.constant 0 : index
    %210 = vector.load %arg7[%c0_70, %c0_71] : memref<4x4xf32, #tpu.memory_space<vmem>>, vector<4x4xf32>
    tpu.vector_store %arg7[%c0_70, %c0_71], %209 {strides = array<i32>} : memref<4x4xf32, #tpu.memory_space<vmem>>, vector<4x4xf32>,
    %cst_72 = arith.constant dense<0xFF800000> : vector<4xf32>
    %211 = vector.multi_reduction <maximumf>, %209, %cst_72 [1] : vector<4x4xf32> to vector<4xf32>
    %212 = vector.shape_cast %211 : vector<4xf32> to vector<4x1xf32>
    %213 = vector.broadcast %212 : vector<4x1xf32> to vector<4x4xf32>
    %214 = arith.subf %209, %213 : vector<4x4xf32>
    %215 = math.exp %214 : vector<4x4xf32>
    %cst_73 = arith.constant dense<0.000000e+00> : vector<4xf32>
    %216 = vector.multi_reduction <add>, %215, %cst_73 [1] : vector<4x4xf32> to vector<4xf32>
    %217 = vector.shape_cast %216 : vector<4xf32> to vector<4x1xf32>
    %218 = math.log %217 : vector<4x1xf32>
    %219 = arith.addf %218, %212 : vector<4x1xf32>
    %220 = arith.mulf %206, %104 : vector<4x32xf32>
    %cst_74 = arith.constant dense<0.000000e+00> : vector<4xf32>
    %221 = vector.multi_reduction <add>, %220, %cst_74 [1] : vector<4x32xf32> to vector<4xf32>
    %222 = vector.shape_cast %221 : vector<4xf32> to vector<4x1xf32>
    %223 = arith.subf %219, %222 : vector<4x1xf32>
    %224 = vector.shape_cast %223 : vector<4x1xf32> to vector<1x4x1xf32>
    %cst_75 = arith.constant dense<0.000000e+00> : vector<1xf32>
    %225 = vector.multi_reduction <add>, %224, %cst_75 [1, 2] : vector<1x4x1xf32> to vector<1xf32>
    %226 = vector.shape_cast %225 : vector<1xf32> to vector<1x1x1xf32>
    %227 = vector.extract %226[0, 0, 0] : f32 from vector<1x1x1xf32>
    %cst_76 = arith.constant 2.500000e-01 : f32
    %228 = arith.mulf %227, %cst_76 : f32
    %c0_77 = arith.constant 0 : index
    %229 = memref.load %arg8[%c0_77] : memref<1xf32, #tpu.memory_space<smem>>
    memref.store %228, %arg8[%c0_77] : memref<1xf32, #tpu.memory_space<smem>>
    return
  }
}

</mosaic_0001>

<bundles_post_ra>
// kernel: model_forward.1
= control target key start
LH: loop header
LB: loop body
LE: loop exit
PB: predicated region body
PF: predicated region fallthrough
CT: control target
= control target key end

     0   :  { %14 = vsyncpa [#allocation3], 0  ;;  %s1182_s0 = inlined_call_operand.vmem [shape: s32[4,8], index: 0, kind: input, shape index: {}]   ;;  %s1183_s1 = inlined_call_operand.vmem [shape: s32[4,8], index: 1, kind: input, shape index: {}]   ;;  %s1184_s2 = inlined_call_operand.vmem [shape: f32[64,32], index: 2, kind: input, shape index: {}]   ;;  %s1185_s3 = inlined_call_operand.vmem [shape: f32[32,32], index: 3, kind: input, shape index: {}]   ;;  %s1186_s4 = inlined_call_operand.vmem [shape: f32[1,32], index: 4, kind: input, shape index: {}]   ;;  %s1187_s5 = inlined_call_operand.hbm [shape: f32[4,32], index: 5, kind: output, shape index: {0}]   ;;  %s1188_s6 = inlined_call_operand.hbm [shape: f32[4,32], index: 6, kind: output, shape index: {1}]   ;;  %s1189_s7 = inlined_call_operand.hbm [shape: f32[4,4], index: 7, kind: output, shape index: {2}]   ;;  %s1190_s8 = inlined_call_operand.hbm [shape: f32[1], index: 8, kind: output, shape index: {3}]  }
   0x1   :  { %15 = vsyncpa [#allocation6], 0  ;;  %v40_v0 = vld [vmem:[%s1182_s0] sm:$0xf]  ;;  %v931_v1 = vmov 1   ;;  %v932_v2 = vmov 0  }
   0x2   :  { %824 = vset.pattern.permute.xlu1 %v931_v1  ;;  %823 = vset.pattern.permute.xlu0 %v932_v2  ;;  %vm43_vm0 = vcmp.ne.s32.totalorder %v40_v0, 1 }
   0x3   :  { %16 = vsyncpa [#allocation4], 0  ;;  %57 = vperm.xlu1 %824, %v40_v0   ;;  %45 = vperm.xlu0 %823, %v40_v0   ;;  %v48_v3 = vsel %vm43_vm0, 1, %v932_v2  ;;  %v933_v4 = vmov 0.0   ;;  %v934_v5 = vmov 2   ;;  %v935_v6 = vmov 3  }
   0x4   :  { %742 = vmatprep.subr.mxu0 %v933_v4  ;;  %761 = vmatprep.subr.mxu1 %v933_v4  ;;  %v936_v7 = vmov 4   ;;  %v937_v8 = vmov 5   ;;  %v938_v9 = vmov 6   ;;  %v1003_v10 = vld [vmem:[%s1184_s2 + $0x38] sm:$0xff]  ;;  %v1010_v11 = vld [vmem:[%s1184_s2 + $0x30] sm:$0xff]  ;;  %v1017_v12 = vld [vmem:[%s1184_s2 + $0x28] sm:$0xff]  ;;  %v41_v28 = vlaneseq }
   0x5   :  { %743 = vmatpush3.msra.mxu0 %v1003_v10  ;;  %v1024_v13 = vld [vmem:[%s1184_s2 + $0x20] sm:$0xff]  ;;  %v1029_v14 = vld [vmem:[%s1184_s2 + $0x18] sm:$0xff]  ;;  %v939_v15 = vmov 7   ;;  %v1039_v16 = vld [vmem:[%s1184_s2 + $0x10] sm:$0xff]  ;;  %vm940_vm1 = vmmov 0   ;;  %s942_s9 = smov [#allocation2]  }
   0x6   :  { %744 = vmatprep.subr.mxu0 %v933_v4  ;;  %v1046_v17 = vld [vmem:[%s1184_s2 + $0x8] sm:$0xff]  ;;  %v1052_v18 = vld [vmem:[%s1184_s2] sm:$0xff]  ;;  %758 = vmatprep.mubr.msk.f32.mxu0 %vm940_vm1, %v933_v4  ;;  %v1079_v30 = vand.u32 127, %v41_v28  ;;  %v38_v55 = vld [vmem:[%s1185_s3 + $0x18] sm:$0xff]  ;;  %s657_s10 = sshll.u32 %s942_s9, 4  ;;  %s658_s10 = int_to_ptr.vmem [resolvable:$true] %s657_s10 }
   0x7   :  { %61 = vperm.xlu1 %824, %v48_v3   ;;  %50 = vperm.xlu0 %823, %v48_v3   ;;  %v1061_v19 = vld [vmem:[%s1183_s1] sm:$0xf]  ;;  %v37_v56 = vld [vmem:[%s1185_s3 + $0x10] sm:$0xff]  ;;  %v36_v57 = vld [vmem:[%s1185_s3 + $0x8] sm:$0xff] }
   0x8   :  { %745 = vmatpush3.msra.mxu0 %v1010_v11  ;;  %769 = vmatprep.mubr.msk.f32.mxu1 %vm940_vm1, %v933_v4  ;;  %vm296_vm2 = vcmp.ne.s32.totalorder %v1061_v19, 1  ;;  %v35_v59 = vld [vmem:[%s1185_s3] sm:$0xff] }
   0x9   :  { %746 = vmatprep.subr.mxu0 %v933_v4  ;;  %v301_v20 = vsel %vm296_vm2, 1, %v932_v2  ;;  %762 = vmatpush3.msra.mxu1 %v38_v55 }
   0xa   :  { %747 = vmatpush3.msra.mxu0 %v1017_v12  ;;  %763 = vmatprep.subr.mxu1 %v933_v4 }
   0xb   :  { %826 = vset.pattern.permute.xlu1 %v934_v5  ;;  %825 = vset.pattern.permute.xlu0 %v934_v5 }
   0xc   :  { %72 = vperm.xlu1 %826, %v48_v3   ;;  %68 = vperm.xlu0 %825, %v40_v0  }
   0xd   :  { %748 = vmatprep.subr.mxu0 %v933_v4  ;;  %764 = vmatpush3.msra.mxu1 %v37_v56 }
   0xe   :  { %749 = vmatpush3.msra.mxu0 %v1024_v13  ;;  %765 = vmatprep.subr.mxu1 %v933_v4 }
   0xf   :  { %750 = vmatprep.subr.mxu0 %v933_v4  ;;  %766 = vmatpush3.msra.mxu1 %v36_v57 }
  0x10   :  { %827 = vset.pattern.permute.xlu1 %v935_v6  ;;  %828 = vset.pattern.permute.xlu0 %v935_v6 }
  0x11   :  { %79 = vperm.xlu1 %827, %v40_v0   ;;  %83 = vperm.xlu0 %828, %v48_v3  }
  0x12   :  { %751 = vmatpush3.msra.mxu0 %v1029_v14  ;;  %767 = vmatprep.subr.mxu1 %v933_v4 }
  0x13   :  { %752 = vmatprep.subr.mxu0 %v933_v4  ;;  %768 = vmatpush3.msra.mxu1 %v35_v59 }
  0x14   :  { %753 = vmatpush3.msra.mxu0 %v1039_v16  ;;  %772 = vmatprep.subr.mxu1 %v933_v4 }
  0x15   :  { %829 = vset.pattern.permute.xlu1 %v936_v7  ;;  %830 = vset.pattern.permute.xlu0 %v937_v8 }
  0x16   :  { %90 = vperm.xlu1 %829, %v40_v0   ;;  %101 = vperm.xlu0 %830, %v40_v0  }
  0x17   :  { %754 = vmatprep.subr.mxu0 %v933_v4 }
  0x18   :  { %755 = vmatpush3.msra.mxu0 %v1046_v17 }
  0x19   :  { %756 = vmatprep.subr.mxu0 %v933_v4 }
  0x1a   :  { %94 = vperm.xlu1 %829, %v48_v3   ;;  %833 = vset.pattern.permute.xlu0 %v938_v9 }
  0x1b   :  { %116 = vperm.xlu0 %833, %v48_v3   ;;  %757 = vmatpush3.msra.mxu0 %v1052_v18 }
  0x1c   :  { %791 = vmatprep.subr.mxu0 %v933_v4 }
  0x1e   :  { %831 = vset.pattern.permute.xlu1 %v937_v8 }
  0x1f   :  { %105 = vperm.xlu1 %831, %v48_v3   ;;  %839 = vset.pattern.permute.xlu0 %v936_v7 }
  0x23   :  { %832 = vset.pattern.permute.xlu1 %v938_v9 }
  0x24   :  { %112 = vperm.xlu1 %832, %v40_v0  }
  0x28   :  { %834 = vset.pattern.permute.xlu1 %v939_v15 }
  0x29   :  { %123 = vperm.xlu1 %834, %v40_v0  }
  0x2d   :  { %127 = vperm.xlu1 %834, %v48_v3  }
  0x31   :  { %835 = vset.pattern.permute.xlu1 %v932_v2 }
  0x32   :  { %298 = vperm.xlu1 %835, %v1061_v19  }
  0x36   :  { %303 = vperm.xlu1 %835, %v301_v20  }
  0x3a   :  { %836 = vset.pattern.permute.xlu1 %v931_v1 }
  0x3b   :  { %310 = vperm.xlu1 %836, %v1061_v19  }
  0x3f   :  { %314 = vperm.xlu1 %836, %v301_v20  }
  0x43   :  { %837 = vset.pattern.permute.xlu1 %v934_v5 }
  0x44   :  { %321 = vperm.xlu1 %837, %v1061_v19  }
  0x48   :  { %325 = vperm.xlu1 %837, %v301_v20  }
  0x4c   :  { %838 = vset.pattern.permute.xlu1 %v935_v6 }
  0x4d   :  { %332 = vperm.xlu1 %838, %v1061_v19  }
  0x51   :  { %336 = vperm.xlu1 %838, %v301_v20  }
  0x55   :  { %840 = vset.pattern.permute.xlu1 %v936_v7 }
  0x56   :  { %347 = vperm.xlu1 %840, %v301_v20  }
  0x5a   :  { %841 = vset.pattern.permute.xlu1 %v937_v8 }
  0x5b   :  { %354 = vperm.xlu1 %841, %v1061_v19  }
  0x5f   :  { %358 = vperm.xlu1 %841, %v301_v20  }
  0x63   :  { %842 = vset.pattern.permute.xlu1 %v938_v9 }
  0x64   :  { %365 = vperm.xlu1 %842, %v1061_v19  }
  0x68   :  { %369 = vperm.xlu1 %842, %v301_v20  }
  0x6c   :  { %843 = vset.pattern.permute.xlu1 %v939_v15 }
  0x6d   :  { %376 = vperm.xlu1 %843, %v1061_v19  }
  0x71   :  { %380 = vperm.xlu1 %843, %v301_v20  }
  0x7e   :  { %v58_v21 = vpop.permute.xlu1 %57  ;;  %v46_v22 = vpop.permute.xlu0 %45 }
  0x7f   :  { %vm47_vm4 = vcmp.eq.s32.totalorder %v46_v22, %v1079_v30  ;;  %vm59_vm6 = vcmp.eq.s32.totalorder %v58_v21, %v1079_v30 }
  0x82   :  { %v62_v23 = vpop.permute.xlu1 %61  ;;  %v51_v25 = vpop.permute.xlu0 %50 }
  0x83   :  { %vm63_vm3 = vcmp.eq.s32.totalorder %v62_v23, 1  ;;  %vm52_vm5 = vcmp.eq.s32.totalorder %v51_v25, 1 }
  0x84   :  { %vm64_vm7 = vmand %vm59_vm6, %vm63_vm3 }
  0x85   :  { %vm53_vm10 = vmand %vm47_vm4, %vm52_vm5  ;;  %v65_v35 = vsel %vm64_vm7, 1.0, %v933_v4 }
  0x86   :  { %v54_v36 = vsel %vm53_vm10, 1.0, %v933_v4 }
  0x87   :  { %v73_v24 = vpop.permute.xlu1 %72  ;;  %v69_v27 = vpop.permute.xlu0 %68  ;;  %v66_v40 = vadd.f32 %v65_v35, %v54_v36 }
  0x88   :  { %vm74_vm8 = vcmp.eq.s32.totalorder %v73_v24, 1  ;;  %vm70_vm9 = vcmp.eq.s32.totalorder %v69_v27, %v1079_v30 }
  0x89   :  { %vm75_vm13 = vmand %vm70_vm9, %vm74_vm8 }
  0x8a   :  { %v76_v38 = vsel %vm75_vm13, 1.0, %v933_v4  ;;  %vm133_vm13 = vcmask 519168  }
  0x8b   :  { %v77_v42 = vadd.f32 %v76_v38, %v66_v40 }
  0x8c   :  { %v80_v26 = vpop.permute.xlu1 %79  ;;  %v84_v31 = vpop.permute.xlu0 %83 }
  0x8d   :  { %vm81_vm11 = vcmp.eq.s32.totalorder %v80_v26, %v1079_v30  ;;  %vm85_vm12 = vcmp.eq.s32.totalorder %v84_v31, 1 }
  0x8e   :  { %vm86_vm15 = vmand %vm81_vm11, %vm85_vm12  ;;  %vm138_vm12 = vcmask 523264  }
  0x8f   :  { %v87_v41 = vsel %vm86_vm15, 1.0, %v933_v4 }
  0x90   :  { %v88_v44 = vadd.f32 %v87_v41, %v77_v42 }
  0x91   :  { %v91_v29 = vpop.permute.xlu1 %90  ;;  %v102_v33 = vpop.permute.xlu0 %101 }
  0x92   :  { %vm92_vm0 = vcmp.eq.s32.totalorder %v91_v29, %v1079_v30  ;;  %vm103_vm3 = vcmp.eq.s32.totalorder %v102_v33, %v1079_v30 }
  0x95   :  { %v95_v32 = vpop.permute.xlu1 %94 }
  0x96   :  { %vm96_vm14 = vcmp.eq.s32.totalorder %v95_v32, 1  ;;  %v117_v37 = vpop.permute.xlu0 %116 }
  0x97   :  { %vm97_vm4 = vmand %vm92_vm0, %vm96_vm14  ;;  %vm118_vm6 = vcmp.eq.s32.totalorder %v117_v37, 1 }
  0x98   :  { %v98_v43 = vsel %vm97_vm4, 1.0, %v933_v4 }
  0x99   :  { %v99_v47 = vadd.f32 %v98_v43, %v88_v44 }
  0x9a   :  { %v106_v34 = vpop.permute.xlu1 %105 }
  0x9b   :  { %vm107_vm2 = vcmp.eq.s32.totalorder %v106_v34, 1 }
  0x9c   :  { %vm108_vm7 = vmand %vm103_vm3, %vm107_vm2 }
  0x9d   :  { %v109_v46 = vsel %vm108_vm7, 1.0, %v933_v4 }
  0x9e   :  { %v110_v49 = vadd.f32 %v109_v46, %v99_v47 }
  0x9f   :  { %v113_v39 = vpop.permute.xlu1 %112 }
  0xa0   :  { %vm114_vm5 = vcmp.eq.s32.totalorder %v113_v39, %v1079_v30 }
  0xa1   :  { %vm119_vm8 = vmand %vm114_vm5, %vm118_vm6 }
  0xa2   :  { %v120_v48 = vsel %vm119_vm8, 1.0, %v933_v4 }
  0xa3   :  { %v121_v51 = vadd.f32 %v120_v48, %v110_v49 }
  0xa4   :  { %v124_v45 = vpop.permute.xlu1 %123 }
  0xa5   :  { %vm125_vm9 = vcmp.eq.s32.totalorder %v124_v45, %v1079_v30 }
  0xa8   :  { %v128_v50 = vpop.permute.xlu1 %127 }
  0xa9   :  { %vm129_vm10 = vcmp.eq.s32.totalorder %v128_v50, 1 }
  0xaa   :  { %vm130_vm11 = vmand %vm125_vm9, %vm129_vm10 }
  0xab   :  { %v131_v52 = vsel %vm130_vm11, 1.0, %v933_v4 }
  0xac   :  { %v132_v53 = vadd.f32 %v131_v52, %v121_v51 }
  0xad   :  { %v299_v58 = vpop.permute.xlu1 %298 }
  0xae   :  { %759 = vmatmul.mubr.msk.f32.vlgmr.msra.gmra.mxu0 %vm138_vm12, %v132_v53  ;;  %v134_v54 = vsel %vm133_vm13, %v132_v53, 0.0  ;;  %vm300_vm14 = vcmp.eq.s32.totalorder %v299_v58, %v1079_v30 }
  0xaf   :  { %135 = vadd.xlane.f32.xlu0 %v134_v54  ;;  %799 = vmatprep.mubr.msk.f32.mxu0 %vm940_vm1, %v933_v4 }
  0xb0   :  { %792 = vmatpush3.msra.mxu0 %v38_v55 }
  0xb1   :  { %793 = vmatprep.subr.mxu0 %v933_v4  ;;  %v304_v60 = vpop.permute.xlu1 %303 }
  0xb2   :  { %794 = vmatpush3.msra.mxu0 %v37_v56  ;;  %vm305_vm15 = vcmp.eq.s32.totalorder %v304_v60, 1 }
  0xb3   :  { %795 = vmatprep.subr.mxu0 %v933_v4  ;;  %vm306_vm3 = vmand %vm300_vm14, %vm305_vm15 }
  0xb4   :  { %796 = vmatpush3.msra.mxu0 %v36_v57  ;;  %v307_v9 = vsel %vm306_vm3, 1.0, %v933_v4 }
  0xb5   :  { %797 = vmatprep.subr.mxu0 %v933_v4 }
  0xb6   :  { %798 = vmatpush3.msra.mxu0 %v35_v59  ;;  %v311_v61 = vpop.permute.xlu1 %310 }
  0xb7   :  { %802 = vmatprep.subr.mxu0 %v933_v4  ;;  %vm312_vm0 = vcmp.eq.s32.totalorder %v311_v61, %v1079_v30 }
  0xba   :  { %v315_v62 = vpop.permute.xlu1 %314 }
  0xbb   :  { %vm316_vm2 = vcmp.eq.s32.totalorder %v315_v62, 1 }
  0xbc   :  { %vm317_vm4 = vmand %vm312_vm0, %vm316_vm2 }
  0xbf   :  { %v322_v63 = vpop.permute.xlu1 %321 }
  0xc0   :  { %vm323_vm5 = vcmp.eq.s32.totalorder %v322_v63, %v1079_v30 }
  0xc3   :  { %v326_v0 = vpop.permute.xlu1 %325 }
  0xc4   :  { %vm327_vm6 = vcmp.eq.s32.totalorder %v326_v0, 1 }
  0xc5   :  { %343 = vperm.xlu0 %839, %v1061_v19   ;;  %vm328_vm7 = vmand %vm323_vm5, %vm327_vm6 }
  0xc6   :  { %v329_v21 = vsel %vm328_vm7, 1.0, %v933_v4 }
  0xc8   :  { %v333_v1 = vpop.permute.xlu1 %332 }
  0xc9   :  { %844 = vset.pattern.permute.xlu0 %v939_v15  ;;  %v318_v15 = vsel %vm317_vm4, 1.0, %v933_v4  ;;  %vm334_vm8 = vcmp.eq.s32.totalorder %v333_v1, %v1079_v30 }
  0xca   :  { %v319_v19 = vadd.f32 %v318_v15, %v307_v9 }
  0xcc   :  { %v337_v2 = vpop.permute.xlu1 %336  ;;  %v330_v22 = vadd.f32 %v329_v21, %v319_v19 }
  0xcd   :  { %vm338_vm9 = vcmp.eq.s32.totalorder %v337_v2, 1 }
  0xce   :  { %vm339_vm10 = vmand %vm334_vm8, %vm338_vm9 }
  0xcf   :  { %v340_v24 = vsel %vm339_vm10, 1.0, %v933_v4  ;;  %vm220_vm10 = vcmask 261120  }
  0xd0   :  { %v341_v26 = vadd.f32 %v340_v24, %v330_v22 }
  0xd1   :  { %v348_v3 = vpop.permute.xlu1 %347 }
  0xd2   :  { %vm349_vm2 = vcmp.eq.s32.totalorder %v348_v3, 1 }
  0xd6   :  { %v355_v5 = vpop.permute.xlu1 %354 }
  0xd7   :  { %vm356_vm11 = vcmp.eq.s32.totalorder %v355_v5, %v1079_v30 }
  0xda   :  { %v359_v6 = vpop.permute.xlu1 %358 }
  0xdb   :  { %vm360_vm14 = vcmp.eq.s32.totalorder %v359_v6, 1 }
  0xdc   :  { %vm361_vm3 = vmand %vm356_vm11, %vm360_vm14 }
  0xdd   :  { %v362_v28 = vsel %vm361_vm3, 1.0, %v933_v4 }
  0xdf   :  { %v366_v7 = vpop.permute.xlu1 %365 }
  0xe0   :  { %vm367_vm15 = vcmp.eq.s32.totalorder %v366_v7, %v1079_v30 }
  0xe3   :  { %v370_v8 = vpop.permute.xlu1 %369 }
  0xe4   :  { %vm371_vm0 = vcmp.eq.s32.totalorder %v370_v8, 1 }
  0xe5   :  { %vm372_vm4 = vmand %vm367_vm15, %vm371_vm0 }
  0xe6   :  { %v373_v32 = vsel %vm372_vm4, 1.0, %v933_v4 }
  0xe8   :  { %v377_v20 = vpop.permute.xlu1 %376 }
  0xe9   :  { %vm378_vm6 = vcmp.eq.s32.totalorder %v377_v20, %v1079_v30 }
  0xec   :  { %v381_v25 = vpop.permute.xlu1 %380 }
  0xed   :  { %vm382_vm7 = vcmp.eq.s32.totalorder %v381_v25, 1 }
  0xee   :  { %vm383_vm9 = vmand %vm378_vm6, %vm382_vm7 }
  0xef   :  { %v384_v34 = vsel %vm383_vm9, 1.0, %v933_v4 }
 0x138   :  { %v136_v23 = vpop.xlane.xlu0 %135 }
 0x139   :  { %v137_v38 = vmax.f32 %v136_v23, 1.0 }
 0x13b   :  { %845 = vrcp.f32 %v137_v38 }
 0x140   :  { %v344_v27 = vpop.permute.xlu0 %343 }
 0x141   :  { %vm345_vm5 = vcmp.eq.s32.totalorder %v344_v27, %v1079_v30 }
 0x142   :  { %vm350_vm8 = vmand %vm345_vm5, %vm349_vm2 }
 0x143   :  { %v351_v29 = vsel %vm350_vm8, 1.0, %v933_v4 }
 0x144   :  { %v352_v31 = vadd.f32 %v351_v29, %v341_v26 }
 0x146   :  { %v363_v33 = vadd.f32 %v362_v28, %v352_v31 }
 0x148   :  { %v374_v35 = vadd.f32 %v373_v32, %v363_v33  ;;  %v846_v30 = vpop.eup %845 }
 0x14a   :  { %v385_v36 = vadd.f32 %v384_v34, %v374_v35 }
 0x14c   :  { %v386_v37 = vsel %vm133_vm13, %v385_v36, 0.0  ;;  %vm539_vm13 = vcmask 257024  }
 0x14d   :  { %387 = vadd.xlane.f32.xlu1 %v386_v37 }
 0x16e   :  { %v208_v39 = vpop.f32.mrf.mxu0 }
 0x16f   :  { %v213_v40 = vmul.f32 %v846_v30, %v208_v39 }
 0x170   :  { %v760_v41 = vpop.f32.mrf.mxu0 }
 0x171   :  { %770 = vmatmul.mubr.msk.f32.vlgmr.msra.gmra.mxu1 %vm220_vm10, %v213_v40 }
 0x172   :  { %773 = vmatpush3.msra.mxu1 %v1003_v10  ;;  %788 = vmatprep.mubr.msk.f32.mxu1 %vm940_vm1, %v933_v4 }
 0x173   :  { %774 = vmatprep.subr.mxu1 %v933_v4 }
 0x174   :  { %775 = vmatpush3.msra.mxu1 %v1010_v11 }
 0x175   :  { %776 = vmatprep.subr.mxu1 %v933_v4 }
 0x176   :  { %777 = vmatpush3.msra.mxu1 %v1017_v12  ;;  %v706_v12 = vld [vmem:[%s1186_s4] ss:$0 sm:$0xff]  ;;  %s941_s4 = smov [#allocation5]  }
 0x177   :  { %778 = vmatprep.subr.mxu1 %v933_v4  ;;  %s667_s30 = sshll.u32 %s941_s4, 4  ;;  %s668_s30 = int_to_ptr.vmem [resolvable:$true] %s667_s30 }
 0x178   :  { %779 = vmatpush3.msra.mxu1 %v1024_v13  ;;  %s857_s11 = scalar_lea.vmem %s668_s30, 64  ;;  %p862_p1 = scmp.lt.s32.totalorder %s668_s30, %s668_s30 }
 0x179   :  { %780 = vmatprep.subr.mxu1 %v933_v4  ;;  %p858_p0 = scmp.ne.s32.totalorder %s668_s30, %s857_s11  ;;  %p863_p2 = scmp.lt.s32.totalorder %s857_s11, %s857_s11 }
 0x17a   :  { %781 = vmatpush3.msra.mxu1 %v1029_v14 }
 0x17b   :  { %782 = vmatprep.subr.mxu1 %v933_v4  ;;  %p864_p3 = por %p863_p2, %p862_p1 }
 0x17c   :  { %783 = vmatpush3.msra.mxu1 %v1039_v16 }
 0x17d   :  { %784 = vmatprep.subr.mxu1 %v933_v4  ;;  %p865_p4 = pnand %p864_p3, %p858_p0 }
 0x17e   :  { %785 = vmatpush3.msra.mxu1 %v1046_v17 }
 0x17f   :  { %786 = vmatprep.subr.mxu1 %v933_v4 }
 0x180   :  { %787 = vmatpush3.msra.mxu1 %v1052_v18 }
 0x181   :  { %789 = vmatmul.mubr.msk.f32.vlgmr.msra.gmra.mxu1 %vm138_vm12, %v385_v36  ;;  %vm618_vm12 = vcmask 27648  }
 0x1d6   :  { %v388_v10 = vpop.xlane.xlu1 %387 }
 0x1d7   :  { %v389_v11 = vmax.f32 %v388_v10, 1.0 }
 0x1d9   :  { %847 = vrcp.f32 %v389_v11 }
 0x1e6   :  { %v848_v42 = vpop.eup %847 }
 0x231   :  { %v290_v13 = vpop.f32.mrf.mxu1 }
 0x232   :  { %v291_v14 = vadd.f32 %v706_v12, %v290_v13 }
 0x233   :  { %v771_v16 = vpop.f32.mrf.mxu1 }
 0x234   :  { %849 = vtanh.f32 %v291_v14 }
 0x241   :  { %v850_v17 = vpop.eup %849  ;;  %v459_v43 = vpop.f32.mrf.mxu1 }
 0x242   :  { %v464_v44 = vmul.f32 %v848_v42, %v459_v43  ;;  %540 = vst.msk [vmem:[#allocation2] sm:$0xf] %vm539_vm13, %v850_v17 }
 0x243   :  { %v790_v18 = vpop.f32.mrf.mxu1 }
 0x244   :  { %800 = vmatmul.mubr.msk.f32.vlgmr.msra.gmra.mxu0 %vm220_vm10, %v464_v44 }
 0x245   :  { %803 = vmatpush3.xpose.msk.msra.mxu0 %vm220_vm10, %v850_v17  ;;  %804 = vmatprep.mubr.msk.f32.mxu0 %vm940_vm1, %v933_v4  ;;  %vm637_vm1 = vcmask 3072  }
 0x304   :  { %v534_v45 = vpop.f32.mrf.mxu0 }
 0x305   :  { %v535_v46 = vadd.f32 %v706_v12, %v534_v45 }
 0x306   :  { %v801_v47 = vpop.f32.mrf.mxu0 }
 0x307   :  { %851 = vtanh.f32 %v535_v46 }
 0x314   :  { %v852_v48 = vpop.eup %851 }
 0x315   :  { %805 = vmatmul.mubr.msk.f32.vlgmr.msra.gmra.mxu0 %vm220_vm10, %v852_v48  ;;  %541 = vst.msk [vmem:[#allocation5] sm:$0xf] %vm539_vm13, %v852_v48  ;;  %v632_v56 = vmul.f32 %v852_v48, %v850_v17 }
 0x317   :  { %v633_v57 = vsel %vm539_vm13, %v632_v56, 0.0 }
 0x3d5   :  { %v614_v49 = vpop.f32.mrf.mxu0 }
 0x3d6   :  { %v620_v50 = vsel %vm618_vm12, %v614_v49, -inf  ;;  %619 = vst.msk [vmem:[#allocation7] sm:$0xf] %vm618_vm12, %v614_v49 }
 0x3d7   :  { %621 = vmax.xlane.f32.xlu0 %v620_v50  ;;  %v806_v51 = vpop.f32.mrf.mxu0 }
 0x460   :  { %v622_v52 = vpop.xlane.xlu0 %621 }
 0x461   :  { %v623_v53 = vsub.f32 %v614_v49, %v622_v52 }
 0x463   :  { %v624_v54 = vmul.f32 1.442695, %v623_v53 }
 0x465   :  { %853 = vpow2.f32 %v624_v54 }
 0x472   :  { %v854_v4 = vpop.eup %853 }
 0x473   :  { %v626_v55 = vsel %vm618_vm12, %v854_v4, 0.0 }
 0x474   :  { %627 = vadd.xlane.f32.xlu1 %v626_v55 }
 0x478   :  { %634 = vadd.xlane.f32.xlu1 %v633_v57 }
 0x4fd   :  { %v628_v58 = vpop.xlane.xlu1 %627 }
 0x4fe   :  { %855 = vlog2.f32 %v628_v58 }
 0x501   :  { %v635_v62 = vpop.xlane.xlu1 %634 }
 0x50b   :  { %v856_v59 = vpop.eup %855 }
 0x50c   :  { %v630_v60 = vmul.f32 0.6931472, %v856_v59 }
 0x50e   :  { %v631_v61 = vadd.f32 %v630_v60, %v622_v52 }
 0x510   :  { %v636_v63 = vsub.f32 %v631_v61, %v635_v62 }
 0x512   :  { %v638_v0 = vsel %vm637_vm1, %v636_v63, 0.0 }
 0x513   :  { %639 = vadd.xlane.f32.xlu1 %v638_v0 }
 0x514   :  { %868 = shalt.err (!%p865_p4)
}
 0x515   :  { %670 = dma.vmem_to_hbm [thread:$0]  %s668_s30, 64, %s1188_s6, [#allocation6]  }
 0x516   :  { %s877_s14 = scalar_lea.vmem %s658_s10, 64  ;;  %p882_p6 = scmp.lt.s32.totalorder %s658_s10, %s658_s10 }
 0x517   :  { %p878_p5 = scmp.ne.s32.totalorder %s658_s10, %s877_s14  ;;  %p883_p7 = scmp.lt.s32.totalorder %s877_s14, %s877_s14 }
 0x519   :  { %p884_p8 = por %p883_p7, %p882_p6 }
 0x51b   :  { %p885_p9 = pnand %p884_p8, %p878_p5 }
 0x51d   :  { %888 = shalt.err (!%p885_p9)
}
 0x51e   :  { %660 = dma.vmem_to_hbm [thread:$0]  %s658_s10, 64, %s1187_s5, [#allocation3]  }
 0x51f   :  { %s943_s17 = smov [#allocation7]  }
 0x520   :  { %s677_s18 = sshll.u32 %s943_s17, 4  ;;  %s678_s18 = int_to_ptr.vmem [resolvable:$true] %s677_s18 }
 0x521   :  { %s897_s19 = scalar_lea.vmem %s678_s18, 64  ;;  %p902_p11 = scmp.lt.s32.totalorder %s678_s18, %s678_s18 }
 0x522   :  { %p898_p10 = scmp.ne.s32.totalorder %s678_s18, %s897_s19  ;;  %p903_p12 = scmp.lt.s32.totalorder %s897_s19, %s897_s19 }
 0x524   :  { %p904_p13 = por %p903_p12, %p902_p11 }
 0x526   :  { %p905_p0 = pnand %p904_p13, %p898_p10 }
 0x528   :  { %908 = shalt.err (!%p905_p0)
}
 0x529   :  { %680 = dma.vmem_to_hbm [thread:$0]  %s678_s18, 64, %s1189_s7, [#allocation6]  }
 0x52a   :  { %s944_s22 = smov [#allocation8]  }
 0x59c   :  { %v640_v1 = vpop.xlane.xlu1 %639 }
 0x59d   :  { %v641_v2 = vrot.slane %v640_v1, 4 }
 0x59f   :  { %v642_v3 = vadd.f32 %v641_v2, %v640_v1 }
 0x5a1   :  { %v643_v5 = vrot.slane %v642_v3, 2 }
 0x5a3   :  { %v644_v6 = vadd.f32 %v643_v5, %v642_v3 }
 0x5a5   :  { %v645_v7 = vrot.slane %v644_v6, 1 }
 0x5a7   :  { %v646_v8 = vadd.f32 %v645_v7, %v644_v6 }
 0x5a9   :  { %807 = vpush %v646_v8 }
 0x5da   :  { %s808_s5 = spop %807 }
 0x5db   :  { %s648_s21 = smul.f32 0.25, %s808_s5 }
 0x5dd   :  { %650 = sst [smem:[#allocation8]] %s648_s21 }
 0x5de   :  { %688 = dma.smem_to_hbm %s944_s22, 16, %s1190_s8, [#allocation4]  }
 0x5df   :  { %925 = dma.done.wait [#allocation3], 64  }
 0x5e0   :  { %926 = vsyncadd [#allocation3], 4294967232 }
 0x5e1   :  { %927 = dma.done.wait [#allocation6], 128  }
 0x5e2   :  { %928 = vsyncadd [#allocation6], 4294967168 }
 0x5e3   :  { %929 = dma.done.wait [#allocation4], 16  }
 0x5e4   :  { %930 = vsyncadd [#allocation4], 4294967280 }
 0x5e5   :  { %701 = sfence }
 0x5e6   :  { %702 = vsyncpa [#allocation3], 1 }
 0x5e7   :  { %703 = vsyncpa [#allocation6], 1 }
 0x5e8   :  { %704 = vsyncpa [#allocation4], 1 }

</bundles_post_ra>
